<compile_context>
chip_gen: v5e
topology: v5e:2x2
jax: 0.10.0
libtpu: 0.0.40
codegen_flags: <defaults>
</compile_context>

<pallas_src>
import functools

import jax
import jax.numpy as jnp
from jax.experimental import pallas as pl
from jax.experimental.pallas import tpu as pltpu


def _round_up(x, m):
    return ((x + m - 1) // m) * m


def _mlp_fused_kernel(x_ref, w_ref, b_ref, o_ref, h0_ref, h1_ref, *, padded_dims):
    """Fused MLP forward for one row tile.

    x_ref : [tm, C0p]        bf16 input row tile
    w_ref : [L, Cmax, Cmax]  bf16 stacked zero-padded weights, [Cin, Cout] layout
    b_ref : [L, 1, Cmax]     f32 stacked zero-padded biases
    o_ref : [tm, CLp]        f32 output row tile
    h0/h1 : [tm, Cmax]       bf16 ping-pong activation scratch (stay in VMEM)
    """
    num_layers = len(padded_dims) - 1
    scratch = (h0_ref, h1_ref)

    cin_p = padded_dims[0]
    cur = None  # None -> read activations from x_ref
    for l in range(num_layers):            # static unroll over layers
        cout_p = padded_dims[l + 1]
        if cur is None:
            a = x_ref[...]                  # [tm, C0p] bf16
        else:
            a = scratch[cur][:, :cin_p]     # static slice, bf16
        w = w_ref[l, :cin_p, :cout_p]       # static slice, bf16
        acc = jnp.dot(a, w, preferred_element_type=jnp.float32)   # MXU, f32 acc
        acc = acc + b_ref[l, :, :cout_p]    # f32 bias, broadcast over rows
        if l == num_layers - 1:
            o_ref[...] = acc.astype(o_ref.dtype)      # lane-dense full-block store
        else:
            acc = jnp.maximum(acc, 0.0)               # ReLU in f32 epilogue
            nxt = 0 if cur is None else 1 - cur
            scratch[nxt][:, :cout_p] = acc.astype(scratch[nxt].dtype)
            cur = nxt
            cin_p = cout_p


def mlp_forward(params, x, adj_t=None, *, tm_max=256):
    """Fused-MLP forward.  params: list of (w [Cin,Cout], b [Cout]).  x: [N, Cin]."""
    del adj_t  # accepted for signature parity with the PyTorch module; unused
    n, c_in = x.shape
    num_layers = len(params)
    dims = [c_in] + [w.shape[1] for (w, _) in params]
    assert dims[0] == c_in and all(params[i][0].shape[0] == dims[i] for i in range(num_layers))

    # Pad every feature dim to a multiple of 128 (lane-dense), rows to a multiple of 8.
    padded = [max(128, _round_up(d, 128)) for d in dims]
    cmax = max(padded)

    n8 = _round_up(n, 8)
    tm = tm_max if n8 >= tm_max else n8     # row tile: >=8, up to 256
    n_pad = _round_up(n8, tm)

    # Pack operands: bf16 for MXU inputs, f32 for bias (epilogue stays f32).
    x_p = jnp.zeros((n_pad, padded[0]), jnp.bfloat16)
    x_p = x_p.at[:n, :c_in].set(x.astype(jnp.bfloat16))
    w_stack = jnp.zeros((num_layers, cmax, cmax), jnp.bfloat16)
    b_stack = jnp.zeros((num_layers, 1, cmax), jnp.float32)
    for l, (w, b) in enumerate(params):
        w_stack = w_stack.at[l, : w.shape[0], : w.shape[1]].set(w.astype(jnp.bfloat16))
        b_stack = b_stack.at[l, 0, : b.shape[0]].set(b.astype(jnp.float32))

    # VMEM budget check (double-buffered inputs/outputs + ping-pong scratch).
    vmem_bytes = (
        2 * tm * padded[0] * 2
        + 2 * num_layers * cmax * cmax * 2
        + 2 * num_layers * cmax * 4
        + 2 * tm * padded[-1] * 4
        + 2 * tm * cmax * 2
    )
    # TODO(synk): for very wide hidden dims fall back to a per-layer K/N-tiled path.
    assert vmem_bytes < 12 * 1024 * 1024, "fused-MLP weight stack exceeds safe VMEM budget"

    flops = 2 * n_pad * sum(padded[l] * padded[l + 1] for l in range(num_layers))
    bytes_accessed = (x_p.size * 2 + w_stack.size * 2 + b_stack.size * 4
                      + n_pad * padded[-1] * 4)

    kernel = functools.partial(_mlp_fused_kernel, padded_dims=tuple(padded))
    out = pl.pallas_call(
        kernel,
        out_shape=jax.ShapeDtypeStruct((n_pad, padded[-1]), jnp.float32),
        grid_spec=pltpu.PrefetchScalarGridSpec(
            num_scalar_prefetch=0,
            grid=(n_pad // tm,),
            in_specs=[
                pl.BlockSpec((tm, padded[0]), lambda i: (i, 0)),
                # Constant index_map -> weights / bias DMA'd into VMEM once.
                pl.BlockSpec((num_layers, cmax, cmax), lambda i: (0, 0, 0)),
                pl.BlockSpec((num_layers, 1, cmax), lambda i: (0, 0, 0)),
            ],
            out_specs=pl.BlockSpec((tm, padded[-1]), lambda i: (i, 0)),
            scratch_shapes=[
                pltpu.VMEM((tm, cmax), jnp.bfloat16),
                pltpu.VMEM((tm, cmax), jnp.bfloat16),
            ],
        ),
        compiler_params=pltpu.CompilerParams(
            dimension_semantics=("parallel",)),   # row blocks shard across TCs (v7x)
        cost_estimate=pl.CostEstimate(
            flops=flops, transcendentals=0, bytes_accessed=bytes_accessed),
    )(x_p, w_stack, b_stack)

    return out[:n, : dims[-1]]


def init_mlp_params(key, in_channels, hidden_channels, out_channels, num_layers):
    """Deterministic init matching torch.nn.Linear shapes (weights stored [Cin, Cout])."""
    dims = [in_channels] + [hidden_channels] * (num_layers - 1) + [out_channels]
    params = []
    for i in range(num_layers):
        key, kw, kb = jax.random.split(key, 3)
        cin, cout = dims[i], dims[i + 1]
        bound = 1.0 / jnp.sqrt(cin)
        w = jax.random.uniform(kw, (cin, cout), jnp.float32, -bound, bound)
        b = jax.random.uniform(kb, (cout,), jnp.float32, -bound, bound)
        params.append((w, b))
    return params


if __name__ == "__main__":
    key = jax.random.PRNGKey(0)
    k_params, k_x = jax.random.split(key)

    N = 8
    in_channels = 16
    hidden_channels = 32
    out_channels = 8
    num_layers = 3
    dropout = 0.5  # inference mode -> identity

    params = init_mlp_params(k_params, in_channels, hidden_channels,
                             out_channels, num_layers)
    x = jax.random.normal(k_x, (N, in_channels), dtype=jnp.float32)
    adj_t = None  # unused by the reference forward

    fwd = jax.jit(lambda p, xx: mlp_forward(p, xx, adj_t))
    out = jax.block_until_ready(fwd(params, x))

    # Reference 1: emulate the kernel's exact numerics (bf16 operands, f32 acc/epilogue).
    h = x.astype(jnp.bfloat16)
    for i, (w, b) in enumerate(params):
        acc = jnp.dot(h, w.astype(jnp.bfloat16), preferred_element_type=jnp.float32) + b
        if i < num_layers - 1:
            h = jnp.maximum(acc, 0.0).astype(jnp.bfloat16)
    ref_bf16 = acc

    # Reference 2: pure f32 (loose check: only bf16 quantization error expected).
    hf = x
    for i, (w, b) in enumerate(params):
        accf = hf @ w + b
        if i < num_layers - 1:
            hf = jnp.maximum(accf, 0.0)
    ref_f32 = accf

    assert out.shape == (N, out_channels)
    assert jnp.allclose(out, ref_bf16, atol=1e-3, rtol=1e-3)
    assert jnp.allclose(out, ref_f32, atol=1e-1, rtol=1e-1)

    print("KERNEL_OK")
</pallas_src>

<mosaic_0001>
module attributes {stable_mosaic.version = 11 : i64} {
  func.func @_mlp_fused_kernel(%arg0: i32, %arg1: memref<8x128xbf16, #tpu.memory_space<vmem>>, %arg2: memref<3x128x128xbf16, #tpu.memory_space<vmem>>, %arg3: memref<3x1x128xf32, #tpu.memory_space<vmem>>, %arg4: memref<8x128xf32, #tpu.memory_space<vmem>>, %arg5: memref<8x128xbf16, #tpu.memory_space<vmem>>, %arg6: memref<8x128xbf16, #tpu.memory_space<vmem>>) attributes {dimension_semantics = [#tpu.dimension_semantics<parallel>], iteration_bounds = array<i64: 1>, scalar_prefetch = 0 : i64, scratch_operands = 2 : i64, tpu.core_type = #tpu.core_type<tc>, window_params = [{transform_indices = @transform_0, window_bounds = array<i64: 8, 128>}, {pipeline_mode = #tpu.pipeline_mode<synchronous>, transform_indices = @transform_1, window_bounds = array<i64: 3, 128, 128>}, {pipeline_mode = #tpu.pipeline_mode<synchronous>, transform_indices = @transform_2, window_bounds = array<i64: 3, 1, 128>}, {transform_indices = @transform_3, window_bounds = array<i64: 8, 128>}]} {
    %c0 = arith.constant 0 : index
    %c0_0 = arith.constant 0 : index
    %0 = vector.load %arg1[%c0, %c0_0] : memref<8x128xbf16, #tpu.memory_space<vmem>>, vector<8x128xbf16>
    %c0_1 = arith.constant 0 : index
    %c0_2 = arith.constant 0 : index
    %c0_3 = arith.constant 0 : index
    %1 = vector.load %arg2[%c0_1, %c0_2, %c0_3] : memref<3x128x128xbf16, #tpu.memory_space<vmem>>, vector<1x128x128xbf16>
    %2 = vector.shape_cast %1 : vector<1x128x128xbf16> to vector<128x128xbf16>
    %cst = arith.constant dense<0.000000e+00> : vector<8x128xf32>
    %3 = tpu.matmul %0, %2, %cst {dimension_numbers = #tpu.dot_dimension_numbers<[1], [0], [0], [1], [0, 0, 1, 1], [], []>} : vector<8x128xbf16>, vector<128x128xbf16>, vector<8x128xf32> -> vector<8x128xf32>
    %c0_4 = arith.constant 0 : index
    %c0_5 = arith.constant 0 : index
    %c0_6 = arith.constant 0 : index
    %4 = vector.load %arg3[%c0_4, %c0_5, %c0_6] : memref<3x1x128xf32, #tpu.memory_space<vmem>>, vector<1x1x128xf32>
    %5 = vector.shape_cast %4 : vector<1x1x128xf32> to vector<1x128xf32>
    %6 = vector.broadcast %5 : vector<1x128xf32> to vector<8x128xf32>
    %7 = arith.addf %3, %6 : vector<8x128xf32>
    %cst_7 = arith.constant 0.000000e+00 : f32
    %8 = vector.broadcast %cst_7 : f32 to vector<8x128xf32>
    %9 = arith.maximumf %7, %8 : vector<8x128xf32>
    %10 = arith.truncf %9 : vector<8x128xf32> to vector<8x128xbf16>
    %c0_8 = arith.constant 0 : index
    %c0_9 = arith.constant 0 : index
    %11 = vector.load %arg5[%c0_8, %c0_9] : memref<8x128xbf16, #tpu.memory_space<vmem>>, vector<8x128xbf16>
    tpu.vector_store %arg5[%c0_8, %c0_9], %10 {strides = array<i32>} : memref<8x128xbf16, #tpu.memory_space<vmem>>, vector<8x128xbf16>,
    %c0_10 = arith.constant 0 : index
    %c0_11 = arith.constant 0 : index
    %12 = vector.load %arg5[%c0_10, %c0_11] : memref<8x128xbf16, #tpu.memory_space<vmem>>, vector<8x128xbf16>
    %c1 = arith.constant 1 : index
    %c0_12 = arith.constant 0 : index
    %c0_13 = arith.constant 0 : index
    %13 = vector.load %arg2[%c1, %c0_12, %c0_13] : memref<3x128x128xbf16, #tpu.memory_space<vmem>>, vector<1x128x128xbf16>
    %14 = vector.shape_cast %13 : vector<1x128x128xbf16> to vector<128x128xbf16>
    %cst_14 = arith.constant dense<0.000000e+00> : vector<8x128xf32>
    %15 = tpu.matmul %12, %14, %cst_14 {dimension_numbers = #tpu.dot_dimension_numbers<[1], [0], [0], [1], [0, 0, 1, 1], [], []>} : vector<8x128xbf16>, vector<128x128xbf16>, vector<8x128xf32> -> vector<8x128xf32>
    %c1_15 = arith.constant 1 : index
    %c0_16 = arith.constant 0 : index
    %c0_17 = arith.constant 0 : index
    %16 = vector.load %arg3[%c1_15, %c0_16, %c0_17] : memref<3x1x128xf32, #tpu.memory_space<vmem>>, vector<1x1x128xf32>
    %17 = vector.shape_cast %16 : vector<1x1x128xf32> to vector<1x128xf32>
    %18 = vector.broadcast %17 : vector<1x128xf32> to vector<8x128xf32>
    %19 = arith.addf %15, %18 : vector<8x128xf32>
    %cst_18 = arith.constant 0.000000e+00 : f32
    %20 = vector.broadcast %cst_18 : f32 to vector<8x128xf32>
    %21 = arith.maximumf %19, %20 : vector<8x128xf32>
    %22 = arith.truncf %21 : vector<8x128xf32> to vector<8x128xbf16>
    %c0_19 = arith.constant 0 : index
    %c0_20 = arith.constant 0 : index
    %23 = vector.load %arg6[%c0_19, %c0_20] : memref<8x128xbf16, #tpu.memory_space<vmem>>, vector<8x128xbf16>
    tpu.vector_store %arg6[%c0_19, %c0_20], %22 {strides = array<i32>} : memref<8x128xbf16, #tpu.memory_space<vmem>>, vector<8x128xbf16>,
    %c0_21 = arith.constant 0 : index
    %c0_22 = arith.constant 0 : index
    %24 = vector.load %arg6[%c0_21, %c0_22] : memref<8x128xbf16, #tpu.memory_space<vmem>>, vector<8x128xbf16>
    %c2 = arith.constant 2 : index
    %c0_23 = arith.constant 0 : index
    %c0_24 = arith.constant 0 : index
    %25 = vector.load %arg2[%c2, %c0_23, %c0_24] : memref<3x128x128xbf16, #tpu.memory_space<vmem>>, vector<1x128x128xbf16>
    %26 = vector.shape_cast %25 : vector<1x128x128xbf16> to vector<128x128xbf16>
    %cst_25 = arith.constant dense<0.000000e+00> : vector<8x128xf32>
    %27 = tpu.matmul %24, %26, %cst_25 {dimension_numbers = #tpu.dot_dimension_numbers<[1], [0], [0], [1], [0, 0, 1, 1], [], []>} : vector<8x128xbf16>, vector<128x128xbf16>, vector<8x128xf32> -> vector<8x128xf32>
    %c2_26 = arith.constant 2 : index
    %c0_27 = arith.constant 0 : index
    %c0_28 = arith.constant 0 : index
    %28 = vector.load %arg3[%c2_26, %c0_27, %c0_28] : memref<3x1x128xf32, #tpu.memory_space<vmem>>, vector<1x1x128xf32>
    %29 = vector.shape_cast %28 : vector<1x1x128xf32> to vector<1x128xf32>
    %30 = vector.broadcast %29 : vector<1x128xf32> to vector<8x128xf32>
    %31 = arith.addf %27, %30 : vector<8x128xf32>
    %c0_29 = arith.constant 0 : index
    %c0_30 = arith.constant 0 : index
    %32 = vector.load %arg4[%c0_29, %c0_30] : memref<8x128xf32, #tpu.memory_space<vmem>>, vector<8x128xf32>
    tpu.vector_store %arg4[%c0_29, %c0_30], %31 {strides = array<i32>} : memref<8x128xf32, #tpu.memory_space<vmem>>, vector<8x128xf32>,
    return
  }
  func.func @transform_0(%arg0: i32) -> (i32, i32) {
    %c0_i32 = arith.constant 0 : i32
    %c0_i32_0 = arith.constant 0 : i32
    return %arg0, %c0_i32 : i32, i32
  }
  func.func @transform_1(%arg0: i32) -> (i32, i32, i32) {
    %c0_i32 = arith.constant 0 : i32
    %c0_i32_0 = arith.constant 0 : i32
    %c0_i32_1 = arith.constant 0 : i32
    %c0_i32_2 = arith.constant 0 : i32
    return %c0_i32, %c0_i32_0, %c0_i32_1 : i32, i32, i32
  }
  func.func @transform_2(%arg0: i32) -> (i32, i32, i32) {
    %c0_i32 = arith.constant 0 : i32
    %c0_i32_0 = arith.constant 0 : i32
    %c0_i32_1 = arith.constant 0 : i32
    %c0_i32_2 = arith.constant 0 : i32
    return %c0_i32, %c0_i32_0, %c0_i32_1 : i32, i32, i32
  }
  func.func @transform_3(%arg0: i32) -> (i32, i32) {
    %c0_i32 = arith.constant 0 : i32
    %c0_i32_0 = arith.constant 0 : i32
    return %arg0, %c0_i32 : i32, i32
  }
}

</mosaic_0001>

<bundles_post_ra>
// kernel: _lambda_.1
= control target key start
LH: loop header
LB: loop body
LE: loop exit
PB: predicated region body
PF: predicated region fallthrough
CT: control target
= control target key end

     0   :  { %s580_s0 = inlined_call_operand.vmem [shape: bf16[8,128], index: 0, kind: input, shape index: {}]   ;;  %s581_s1 = inlined_call_operand.vmem [shape: bf16[3,128,128], index: 1, kind: input, shape index: {}]   ;;  %s582_s2 = inlined_call_operand.vmem [shape: f32[3,1,128], index: 2, kind: input, shape index: {}]   ;;  %s583_s3 = inlined_call_operand.hbm [shape: f32[8,128], index: 3, kind: output, shape index: {}]  }
   0x1   :  { %v425_v0 = vld [vmem:[%s581_s1 + $0x38] sm:$0xff]  ;;  %v424_v1 = vld [vmem:[%s581_s1 + $0x30] sm:$0xff] }
   0x2   :  { %84 = vmatpush.bf16.msra.mxu0 %v425_v0  ;;  %v433_v2 = vld [vmem:[%s581_s1 + $0x78] sm:$0xff]  ;;  %v432_v3 = vld [vmem:[%s581_s1 + $0x70] sm:$0xff] }
   0x3   :  { %171 = vmatpush.bf16.msra.mxu1 %v433_v2 }
   0x4   :  { %8 = vsyncpa [#allocation5], 0  ;;  %v423_v4 = vld [vmem:[%s581_s1 + $0x28] sm:$0xff]  ;;  %v422_v6 = vld [vmem:[%s581_s1 + $0x20] sm:$0xff]  ;;  %s472_s13 = smov [#allocation4]   ;;  %s279_s16 = sshll.u32 %s583_s3, 4  ;;  %s280_s16 = int_to_ptr.hbm [resolvable:$true] %s279_s16 }
   0x5   :  { %v431_v5 = vld [vmem:[%s581_s1 + $0x68] sm:$0xff]  ;;  %v430_v7 = vld [vmem:[%s581_s1 + $0x60] sm:$0xff]  ;;  %v421_v8 = vld [vmem:[%s581_s1 + $0x18] sm:$0xff]  ;;  %s277_s14 = sshll.u32 %s472_s13, 4  ;;  %s278_s14 = int_to_ptr.vmem [resolvable:$true] %s277_s14 }
   0x6   :  { %85 = vmatpush.bf16.msra.mxu0 %v424_v1  ;;  %v420_v9 = vld [vmem:[%s581_s1 + $0x10] sm:$0xff]  ;;  %v419_v10 = vld [vmem:[%s581_s1 + $0x8] sm:$0xff]  ;;  %v418_v11 = vld [vmem:[%s581_s1] sm:$0xff] }
   0x7   :  { %172 = vmatpush.bf16.msra.mxu1 %v432_v3  ;;  %v15_v12 = vld [vmem:[%s580_s0] sm:$0xf]  ;;  %v429_v13 = vld [vmem:[%s581_s1 + $0x58] sm:$0xff]  ;;  %v428_v14 = vld [vmem:[%s581_s1 + $0x50] sm:$0xff] }
   0x8   :  { %v427_v15 = vld [vmem:[%s581_s1 + $0x48] sm:$0xff]  ;;  %v426_v16 = vld [vmem:[%s581_s1 + $0x40] sm:$0xff]  ;;  %v441_v17 = vld [vmem:[%s581_s1 + $0xb8] sm:$0xff] }
   0x9   :  { %258 = vmatpush.bf16.msra.mxu2 %v441_v17  ;;  %v440_v18 = vld [vmem:[%s581_s1 + $0xb0] sm:$0xff]  ;;  %v439_v19 = vld [vmem:[%s581_s1 + $0xa8] sm:$0xff]  ;;  %v438_v20 = vld [vmem:[%s581_s1 + $0xa0] sm:$0xff] }
   0xa   :  { %86 = vmatpush.bf16.msra.mxu0 %v423_v4  ;;  %v443_v21 = vld [vmem:[%s582_s2] ss:$0 sm:$0xff]  ;;  %v437_v28 = vld [vmem:[%s581_s1 + $0x98] sm:$0xff]  ;;  %v436_v29 = vld [vmem:[%s581_s1 + $0x90] sm:$0xff] }
   0xb   :  { %173 = vmatpush.bf16.msra.mxu1 %v431_v5  ;;  %v435_v30 = vld [vmem:[%s581_s1 + $0x88] sm:$0xff]  ;;  %v434_v31 = vld [vmem:[%s581_s1 + $0x80] sm:$0xff] }
   0xc   :  { %v444_v32 = vld [vmem:[%s582_s2 + $0x1] ss:$0 sm:$0xff]  ;;  %v445_v39 = vld [vmem:[%s582_s2 + $0x2] ss:$0 sm:$0xff] }
   0xd   :  { %259 = vmatpush.bf16.msra.mxu2 %v440_v18 }
   0xe   :  { %87 = vmatpush.bf16.msra.mxu0 %v422_v6 }
   0xf   :  { %174 = vmatpush.bf16.msra.mxu1 %v430_v7 }
  0x11   :  { %260 = vmatpush.bf16.msra.mxu2 %v439_v19 }
  0x12   :  { %88 = vmatpush.bf16.msra.mxu0 %v421_v8 }
  0x13   :  { %175 = vmatpush.bf16.msra.mxu1 %v429_v13 }
  0x15   :  { %261 = vmatpush.bf16.msra.mxu2 %v438_v20 }
  0x16   :  { %89 = vmatpush.bf16.msra.mxu0 %v420_v9 }
  0x17   :  { %176 = vmatpush.bf16.msra.mxu1 %v428_v14 }
  0x19   :  { %262 = vmatpush.bf16.msra.mxu2 %v437_v28 }
  0x1a   :  { %90 = vmatpush.bf16.msra.mxu0 %v419_v10 }
  0x1b   :  { %177 = vmatpush.bf16.msra.mxu1 %v427_v15 }
  0x1d   :  { %263 = vmatpush.bf16.msra.mxu2 %v436_v29 }
  0x1e   :  { %91 = vmatpush.bf16.msra.mxu0 %v418_v11 }
  0x1f   :  { %178 = vmatpush.bf16.msra.mxu1 %v426_v16 }
  0x21   :  { %92 = vmatmul.bf16.vlgmr.msra.gmra.mxu0 %v15_v12  ;;  %264 = vmatpush.bf16.msra.mxu2 %v435_v30 }
  0x25   :  { %265 = vmatpush.bf16.msra.mxu2 %v434_v31 }
  0x9e   :  { %v93_v22 = vpop.f32.mrf.mxu0 }
  0x9f   :  { %v94_v23 = vadd.f32 %v443_v21, %v93_v22 }
  0xa1   :  { %v97_v24 = vmax.f32 %v94_v23, 0.0 }
  0xa3   :  { %v98_v25 = vpack.c.bf16 %v97_v24, %v97_v24 }
  0xa5   :  { %99 = vst [vmem:[#allocation2] sm:$0xf] %v98_v25 }
  0xa6   :  { %v95_v26 = vpop.f32.mrf.mxu0 }
  0xac   :  { %v100_v27 = vld [vmem:[#allocation2] sm:$0xf] }
  0xad   :  { %179 = vmatmul.bf16.vlgmr.msra.gmra.mxu1 %v100_v27 }
 0x12a   :  { %v180_v33 = vpop.f32.mrf.mxu1 }
 0x12b   :  { %v181_v34 = vadd.f32 %v444_v32, %v180_v33 }
 0x12d   :  { %v184_v35 = vmax.f32 %v181_v34, 0.0 }
 0x12f   :  { %v185_v36 = vpack.c.bf16 %v184_v35, %v184_v35 }
 0x131   :  { %186 = vst [vmem:[#allocation3] sm:$0xf] %v185_v36 }
 0x132   :  { %v182_v37 = vpop.f32.mrf.mxu1 }
 0x138   :  { %v187_v38 = vld [vmem:[#allocation3] sm:$0xf] }
 0x139   :  { %266 = vmatmul.bf16.vlgmr.msra.gmra.mxu2 %v187_v38 }
 0x1bc   :  { %v267_v40 = vpop.f32.mrf.mxu2 }
 0x1bd   :  { %v268_v41 = vadd.f32 %v445_v39, %v267_v40 }
 0x1bf   :  { %271 = vst [vmem:[#allocation4] sm:$0xff] %v268_v41 }
 0x1c0   :  { %282 = dma.vmem_to_hbm [thread:$0]  %s278_s14, 128, %s280_s16, [#allocation5]  }
 0x1c4   :  { %v269_v42 = vpop.f32.mrf.mxu2 }
 0x1c5   :  { %470 = dma.done.wait [#allocation5], 128  }
 0x1c6   :  { %471 = vsyncadd [#allocation5], 4294967168 }
 0x1c7   :  { %287 = vsyncpa [#allocation5], 1 }

</bundles_post_ra>
